<compile_context>
chip_gen: v5e
topology: v5e:2x2
jax: 0.10.0
libtpu: 0.0.40
codegen_flags: <defaults>
</compile_context>

<pallas_src>
import functools
import math

import jax
import jax.numpy as jnp
from jax.experimental import pallas as pl
from jax.experimental.pallas import tpu as pltpu


# ---------------------------------------------------------------------------
# Per-generation VMEM budgeting
# ---------------------------------------------------------------------------
@functools.lru_cache(maxsize=1)
def _vmem_limit_bytes():
    """Scoped-VMEM request sized per TPU generation.

    v7x has 64 MiB physical VMEM per TensorCore; v5e/v6e have 128 MiB. Use ~3/4 of
    physical (capped at 96 MiB) and fall back to the v7x-safe 48 MiB if the query
    fails for any reason."""
    try:
        cap = int(pltpu.get_tpu_info().vmem_capacity_bytes)
    except Exception:  # API drift / non-TPU backend -> be conservative
        cap = 64 * 1024 * 1024
    return int(min(cap * 3 // 4, 96 * 1024 * 1024))


def _tile_budget_bytes():
    # Leave headroom below the scoped limit for Mosaic internal scratch / temporaries.
    return (_vmem_limit_bytes() * 3) // 5


def _round_up(x, m):
    return ((x + m - 1) // m) * m


def _choose_tile_rows(n_rows, dim, itemsize, n_streams):
    """Largest row tile (multiple of 8, <= 1024) whose double-buffered blocks for all
    row-streams (inputs + output) fit the VMEM budget."""
    per_row = 2 * n_streams * dim * itemsize  # each stream is double-buffered
    tr = _tile_budget_bytes() // max(per_row, 1)
    tr = (tr // 8) * 8
    tr = max(8, min(1024, tr))
    tr = min(tr, _round_up(n_rows, 8))  # never allocate more rows than needed
    return int(tr)


def _choose_q_tile(T, D, itemsize):
    """Q-tile rows for the attention kernel given full-extent (T, D) K/V blocks."""
    kv_bytes = 2 * 2 * T * D * itemsize                    # K and V blocks, double-buffered
    rem = _tile_budget_bytes() - kv_bytes
    per_row = 2 * 2 * D * itemsize + 4 * T * 4             # q/o blocks + f32 scores/probs
    tq = rem // max(per_row, 1) if rem > 0 else 0
    tq = max(8, (int(tq) // 8) * 8)
    tq = min(tq, 1024)
    if tq >= T:
        return int(T)                                       # full extent, no partial block
    return int(tq)


# ---------------------------------------------------------------------------
# RMSNorm kernels (plain and fused-residual)
# ---------------------------------------------------------------------------
def _rmsnorm_kernel(x_ref, w_ref, o_ref, *, eps):
    # x_ref: (tile_rows, D), w_ref: (1, D), o_ref: (tile_rows, D)
    x = x_ref[...].astype(jnp.float32)
    ms = jnp.mean(x * x, axis=-1, keepdims=True)
    inv = jax.lax.rsqrt(ms + eps)                           # EUP op
    o_ref[...] = (w_ref[...].astype(jnp.float32) * (x * inv)).astype(o_ref.dtype)


def _rmsnorm_residual_kernel(x_ref, r_ref, w_ref, o_ref, *, eps):
    # Fused (x + r) -> RMSNorm. Saves a full HBM round-trip for the residual add.
    s = x_ref[...].astype(jnp.float32) + r_ref[...].astype(jnp.float32)
    ms = jnp.mean(s * s, axis=-1, keepdims=True)
    inv = jax.lax.rsqrt(ms + eps)
    o_ref[...] = (w_ref[...].astype(jnp.float32) * (s * inv)).astype(o_ref.dtype)


def _rmsnorm_call(kernel, inputs, weight, eps, n_streams):
    x = inputs[0]
    orig_shape = x.shape
    dim = orig_shape[-1]
    flats = [a.reshape(-1, dim) for a in inputs]
    n_rows = flats[0].shape[0]
    tile_rows = _choose_tile_rows(n_rows, dim, jnp.dtype(x.dtype).itemsize, n_streams)
    w2d = weight.reshape(1, dim)

    # cdiv grid; the partial last block is masked on write-back. The reduction is
    # per-row so out-of-bounds rows cannot contaminate valid rows.
    row_spec = pl.BlockSpec((tile_rows, dim), lambda i: (i, 0))
    out = pl.pallas_call(
        functools.partial(kernel, eps=eps),
        out_shape=jax.ShapeDtypeStruct((n_rows, dim), x.dtype),
        grid_spec=pltpu.PrefetchScalarGridSpec(
            num_scalar_prefetch=0,
            grid=(pl.cdiv(n_rows, tile_rows),),
            in_specs=[row_spec] * len(flats) + [pl.BlockSpec((1, dim), lambda i: (0, 0))],
            out_specs=row_spec,
        ),
        compiler_params=pltpu.CompilerParams(
            dimension_semantics=("parallel",),              # lets v7x shard rows across TCs
            vmem_limit_bytes=_vmem_limit_bytes(),
        ),
    )(*flats, w2d)
    return out.reshape(orig_shape)


def rmsnorm(x, weight, eps=1e-05):
    """RMSNorm over the last axis; weight has shape (dim,). Dtype-preserving."""
    return _rmsnorm_call(_rmsnorm_kernel, (x,), weight, eps, n_streams=2)


def rmsnorm_residual(x, r, weight, eps=1e-05):
    """RMSNorm(x + r) over the last axis — residual add fused into the norm kernel."""
    return _rmsnorm_call(_rmsnorm_residual_kernel, (x, r), weight, eps, n_streams=3)


# ---------------------------------------------------------------------------
# Fused multi-head attention kernel (heads looped in-kernel, lane-dense output block)
# ---------------------------------------------------------------------------
def _attention_kernel(q_ref, k_ref, v_ref, o_ref, *, nhead, dh, scale):
    # q_ref/o_ref: (1, tq, D) blocks; k_ref/v_ref: (1, T, D) blocks for one batch.
    q = q_ref[0]                                            # native dtype (no f32 upcast)
    k = k_ref[0]
    v = v_ref[0]
    for h in range(nhead):                                  # static unroll over heads
        lo = h * dh
        qh = q[:, lo:lo + dh] * scale                       # fold 1/temperature into q
        kh = k[:, lo:lo + dh]
        vh = v[:, lo:lo + dh]
        # MXU matmuls with f32 accumulation; operands stay in the activation dtype.
        s = jax.lax.dot_general(qh, kh, (((1,), (1,)), ((), ())),
                                preferred_element_type=jnp.float32)      # (tq, T)
        m = jnp.max(s, axis=-1, keepdims=True)
        p = jnp.exp(s - m)
        l = jnp.sum(p, axis=-1, keepdims=True)
        o = jax.lax.dot_general(p.astype(vh.dtype), vh, (((1,), (0,)), ((), ())),
                                preferred_element_type=jnp.float32)      # (tq, dh)
        # Normalize the small (tq, dh) result (EUP reciprocal) instead of the (tq, T)
        # probability matrix.
        o = o * pl.reciprocal(l, approx=True)
        # Static-sliced VMEM store per head; the HBM write-back of the whole (1, tq, D)
        # output block stays lane-dense (full D wide).
        o_ref[0, :, lo:lo + dh] = o.astype(o_ref.dtype)


def mha_attention(q, k, v, *, nhead, scale):
    """q, k, v: (N, T, D). Per-head softmax(q_h k_h^T * scale) @ v_h, heads re-packed
    along the last axis (matches torch.concat over heads)."""
    N, T, D = q.shape
    assert D % nhead == 0
    dh = D // nhead
    tq = _choose_q_tile(T, D, jnp.dtype(q.dtype).itemsize)

    qo_spec = pl.BlockSpec((1, tq, D), lambda n, t: (n, t, 0))
    kv_spec = pl.BlockSpec((1, T, D), lambda n, t: (n, 0, 0))
    return pl.pallas_call(
        functools.partial(_attention_kernel, nhead=nhead, dh=dh, scale=scale),
        out_shape=jax.ShapeDtypeStruct((N, T, D), q.dtype),
        grid_spec=pltpu.PrefetchScalarGridSpec(
            num_scalar_prefetch=0,
            grid=(N, pl.cdiv(T, tq)),
            in_specs=[qo_spec, kv_spec, kv_spec],
            out_specs=qo_spec,
        ),
        compiler_params=pltpu.CompilerParams(
            # Two parallel axes so a v7x megacore stays balanced even at small/odd N.
            dimension_semantics=("parallel", "parallel"),
            vmem_limit_bytes=_vmem_limit_bytes(),
        ),
    )(q, k, v)


# ---------------------------------------------------------------------------
# Full SAttention forward (inference)
# ---------------------------------------------------------------------------
def sattention_forward(x, params, *, nhead, eps=1e-05, matmul_dtype=None, precision=None):
    """x: (T, N, d_model). Mirrors SAttention.forward (RMSNorm norms, eval-mode dropout).

    matmul_dtype=jnp.bfloat16 runs the projection/FFN matmuls with bf16 operands and
    f32 accumulation (full MXU rate); None keeps the native activation dtype.
    `precision` is threaded to the wrapper einsums (None = default fast MXU path)."""
    T, N, D = x.shape
    assert D % nhead == 0, "d_model must be divisible by nhead"
    scale = 1.0 / math.sqrt(D / nhead)
    act_dtype = x.dtype

    def dense(a, w, out_layout, b=None):
        # PyTorch Linear: y = a @ w.T (+ b). out_layout "nte" emits q/k/v directly in
        # (batch, seq, d_model) layout, so the torch .transpose(0, 1) costs no extra
        # HBM pass.
        aa, ww = a, w
        if matmul_dtype is not None:
            aa, ww = a.astype(matmul_dtype), w.astype(matmul_dtype)
        y = jnp.einsum(f"tnd,ed->{out_layout}", aa, ww,
                       preferred_element_type=jnp.float32, precision=precision)
        if b is not None:
            y = y + b
        return y.astype(act_dtype)

    # norm1
    xn = rmsnorm(x, params["norm1_w"], eps)

    # q/k/v projections (no bias), emitted directly in (N, T, D) layout.
    q = dense(xn, params["wq"], "nte")
    k = dense(xn, params["wk"], "nte")
    v = dense(xn, params["wv"], "nte")

    # Fused per-batch attention; heads handled in-kernel (no split/merge transposes).
    att = mha_attention(q, k, v, nhead=nhead, scale=scale)   # (N, T, D)
    att = jnp.swapaxes(att, 0, 1)                            # back to (T, N, D)

    att = rmsnorm(att, params["norm1_2_w"], eps)
    # xt = norm2(xn + att)  — residual add fused into the norm kernel.
    # (The torch code rebinds x = norm1(x), so the residual uses the *normalized* input.)
    xt = rmsnorm_residual(xn, att, params["norm2_w"], eps)

    # FFN: Linear -> ReLU -> (dropout=id) -> Linear -> (dropout=id)
    h = jnp.maximum(dense(xt, params["w1"], "tne", params["b1"]), 0)
    h = dense(h, params["w2"], "tne", params["b2"])

    # out = norm2_2(xt + FFN(xt)) — residual add fused into the norm kernel.
    return rmsnorm_residual(xt, h, params["norm2_2_w"], eps)


# ---------------------------------------------------------------------------
# Pure-JAX references (per-op "highest" precision, scoped to the check only)
# ---------------------------------------------------------------------------
def _rmsnorm_ref(x, w, eps):
    xf = x.astype(jnp.float32)
    rms = jnp.sqrt(jnp.mean(xf * xf, axis=-1, keepdims=True) + eps)
    return (w * (xf / rms)).astype(x.dtype)


def _sattention_ref(x, params, *, nhead, eps=1e-05):
    T, N, D = x.shape
    dh = D // nhead
    scale = 1.0 / math.sqrt(D / nhead)
    hi = jax.lax.Precision.HIGHEST
    xn = _rmsnorm_ref(x, params["norm1_w"], eps)
    q = jnp.einsum("tnd,ed->nte", xn, params["wq"], precision=hi)
    k = jnp.einsum("tnd,ed->nte", xn, params["wk"], precision=hi)
    v = jnp.einsum("tnd,ed->nte", xn, params["wv"], precision=hi)
    outs = []
    for h in range(nhead):
        sl = slice(h * dh, (h + 1) * dh)
        s = jnp.einsum("ntd,nsd->nts", q[..., sl], k[..., sl], precision=hi) * scale
        p = jax.nn.softmax(s, axis=-1)
        outs.append(jnp.einsum("nts,nsd->ntd", p, v[..., sl], precision=hi))
    att = jnp.swapaxes(jnp.concatenate(outs, axis=-1), 0, 1)       # (T, N, D)
    att = _rmsnorm_ref(att, params["norm1_2_w"], eps)
    xt = _rmsnorm_ref(xn + att, params["norm2_w"], eps)
    hh = jnp.maximum(jnp.einsum("tnd,ed->tne", xt, params["w1"], precision=hi) + params["b1"], 0.0)
    hh = jnp.einsum("tnd,ed->tne", hh, params["w2"], precision=hi) + params["b2"]
    return _rmsnorm_ref(xt + hh, params["norm2_2_w"], eps)


if __name__ == "__main__":
    key = jax.random.PRNGKey(0)
    seq, batch, d_model, nhead = 8, 2, 32, 4
    eps = 1e-05
    hi = jax.lax.Precision.HIGHEST

    keys = jax.random.split(key, 8)
    x = jax.random.normal(keys[0], (seq, batch, d_model), dtype=jnp.float32)
    wscale = 1.0 / math.sqrt(d_model)
    params = dict(
        wq=jax.random.normal(keys[1], (d_model, d_model), jnp.float32) * wscale,
        wk=jax.random.normal(keys[2], (d_model, d_model), jnp.float32) * wscale,
        wv=jax.random.normal(keys[3], (d_model, d_model), jnp.float32) * wscale,
        w1=jax.random.normal(keys[4], (d_model, d_model), jnp.float32) * wscale,
        b1=jax.random.normal(keys[5], (d_model,), jnp.float32) * 0.1,
        b2=jax.random.normal(keys[7], (d_model,), jnp.float32) * 0.1,
        w2=jax.random.normal(keys[6], (d_model, d_model), jnp.float32) * wscale,
        # RMSNorm weights init to ones, matching nn.Parameter(torch.ones(dim))
        norm1_w=jnp.ones((d_model,), jnp.float32),
        norm1_2_w=jnp.ones((d_model,), jnp.float32),
        norm2_w=jnp.ones((d_model,), jnp.float32),
        norm2_2_w=jnp.ones((d_model,), jnp.float32),
    )

    # Pin per-op precision in the forward only for this numerical check; the function's
    # default (precision=None) uses the fast MXU path.
    y = sattention_forward(x, params, nhead=nhead, eps=eps, precision=hi)
    y = jax.block_until_ready(y)

    # Tight standalone checks of the RMSNorm Pallas kernels.
    yn = jax.block_until_ready(rmsnorm(x, params["norm1_w"], eps))
    assert jnp.allclose(yn, _rmsnorm_ref(x, params["norm1_w"], eps), atol=1e-5, rtol=1e-5), \
        "rmsnorm mismatch vs reference"
    r = 0.5 * x + 1.0
    yr = jax.block_until_ready(rmsnorm_residual(x, r, params["norm2_w"], eps))
    assert jnp.allclose(yr, _rmsnorm_ref(x + r, params["norm2_w"], eps), atol=1e-5, rtol=1e-5), \
        "rmsnorm_residual mismatch vs reference"

    # Full-forward check vs pure-JAX reference (matmul / approx-reciprocal rounding ->
    # modest tolerance; structural bugs would show O(1) errors).
    y_ref = _sattention_ref(x, params, nhead=nhead, eps=eps)
    assert jnp.allclose(y, y_ref, atol=1e-2, rtol=1e-2), "SAttention forward mismatch vs reference"

    print("KERNEL_OK")
</pallas_src>

<mosaic_0001>
module attributes {stable_mosaic.version = 11 : i64} {
  func.func @_rmsnorm_kernel(%arg0: i32, %arg1: memref<16x32xf32, #tpu.memory_space<vmem>>, %arg2: memref<1x32xf32, #tpu.memory_space<vmem>>, %arg3: memref<16x32xf32, #tpu.memory_space<vmem>>) attributes {dimension_semantics = [#tpu.dimension_semantics<parallel>], iteration_bounds = array<i64: 1>, scalar_prefetch = 0 : i64, scratch_operands = 0 : i64, tpu.core_type = #tpu.core_type<tc>, window_params = [{transform_indices = @transform_0, window_bounds = array<i64: 16, 32>}, {pipeline_mode = #tpu.pipeline_mode<synchronous>, transform_indices = @transform_1, window_bounds = array<i64: 1, 32>}, {transform_indices = @transform_2, window_bounds = array<i64: 16, 32>}]} {
    %c0 = arith.constant 0 : index
    %c0_0 = arith.constant 0 : index
    %0 = vector.load %arg1[%c0, %c0_0] : memref<16x32xf32, #tpu.memory_space<vmem>>, vector<16x32xf32>
    %1 = arith.mulf %0, %0 : vector<16x32xf32>
    %cst = arith.constant dense<0.000000e+00> : vector<16xf32>
    %2 = vector.multi_reduction <add>, %1, %cst [1] : vector<16x32xf32> to vector<16xf32>
    %3 = vector.shape_cast %2 : vector<16xf32> to vector<16x1xf32>
    %cst_1 = arith.constant 3.200000e+01 : f32
    %4 = vector.broadcast %cst_1 : f32 to vector<16x1xf32>
    %5 = arith.divf %3, %4 : vector<16x1xf32>
    %cst_2 = arith.constant 9.99999974E-6 : f32
    %6 = vector.broadcast %cst_2 : f32 to vector<16x1xf32>
    %7 = arith.addf %5, %6 : vector<16x1xf32>
    %8 = math.rsqrt %7 : vector<16x1xf32>
    %c0_3 = arith.constant 0 : index
    %c0_4 = arith.constant 0 : index
    %9 = vector.load %arg2[%c0_3, %c0_4] : memref<1x32xf32, #tpu.memory_space<vmem>>, vector<1x32xf32>
    %10 = vector.broadcast %8 : vector<16x1xf32> to vector<16x32xf32>
    %11 = arith.mulf %0, %10 : vector<16x32xf32>
    %12 = vector.broadcast %9 : vector<1x32xf32> to vector<16x32xf32>
    %13 = arith.mulf %12, %11 : vector<16x32xf32>
    %c0_5 = arith.constant 0 : index
    %c0_6 = arith.constant 0 : index
    %14 = vector.load %arg3[%c0_5, %c0_6] : memref<16x32xf32, #tpu.memory_space<vmem>>, vector<16x32xf32>
    tpu.vector_store %arg3[%c0_5, %c0_6], %13 {strides = array<i32>} : memref<16x32xf32, #tpu.memory_space<vmem>>, vector<16x32xf32>,
    return
  }
  func.func @transform_0(%arg0: i32) -> (i32, i32) {
    %c0_i32 = arith.constant 0 : i32
    %c0_i32_0 = arith.constant 0 : i32
    return %arg0, %c0_i32 : i32, i32
  }
  func.func @transform_1(%arg0: i32) -> (i32, i32) {
    %c0_i32 = arith.constant 0 : i32
    %c0_i32_0 = arith.constant 0 : i32
    %c0_i32_1 = arith.constant 0 : i32
    return %c0_i32, %c0_i32_0 : i32, i32
  }
  func.func @transform_2(%arg0: i32) -> (i32, i32) {
    %c0_i32 = arith.constant 0 : i32
    %c0_i32_0 = arith.constant 0 : i32
    return %arg0, %c0_i32 : i32, i32
  }
}

</mosaic_0001>

<bundles_post_ra>
// kernel: tpu_custom_call.1
= control target key start
LH: loop header
LB: loop body
LE: loop exit
PB: predicated region body
PF: predicated region fallthrough
CT: control target
= control target key end

     0   :  { %7 = vsyncpa [#allocation3], 0  ;;  %s245_s0 = inlined_call_operand.hbm [shape: f32[16,32], index: 0, kind: input, shape index: {}]   ;;  %s246_s1 = inlined_call_operand.hbm [shape: f32[1,32], index: 1, kind: input, shape index: {}]   ;;  %s247_s2 = inlined_call_operand.hbm [shape: f32[16,32], index: 2, kind: output, shape index: {}]  }
   0x1   :  { %8 = vsyncpa [#allocation6], 0 }
   0x2   :  { %9 = vsyncpa [#allocation4], 0  ;;  %s14_s11 = sshll.u32 %s245_s0, 4  ;;  %s205_s12 = smov [#allocation2]   ;;  %s15_s11 = int_to_ptr.hbm [resolvable:$true] %s14_s11 }
   0x3   :  { %s16_s13 = sshll.u32 %s205_s12, 4  ;;  %s28_s16 = sshll.u32 %s246_s1, 4  ;;  %s17_s13 = int_to_ptr.vmem [resolvable:$true] %s16_s13  ;;  %s29_s16 = int_to_ptr.hbm [resolvable:$true] %s28_s16 }
   0x4   :  { %s206_s17 = smov 128   ;;  %s207_s18 = smov 8  }
   0x5   :  { %22 = dma.hbm_to_vmem [thread:$0]  %s15_s11, 256, %s17_s13, [#allocation3], %s206_s17, %s206_s17, %s207_s18  }
   0x6   :  { %s208_s19 = smov [#allocation5]  }
   0x7   :  { %s30_s20 = sshll.u32 %s208_s19, 4  ;;  %s31_s20 = int_to_ptr.vmem [resolvable:$true] %s30_s20 }
   0x8   :  { %33 = dma.hbm_to_vmem [thread:$0]  %s29_s16, 16, %s31_s20, [#allocation6]  }
   0x9   :  { %199 = dma.done.wait [#allocation3], 256  }
   0xa   :  { %200 = vsyncadd [#allocation3], 4294967040 }
   0xb   :  { %201 = dma.done.wait [#allocation6], 16  }
   0xc   :  { %202 = vsyncadd [#allocation6], 4294967280  ;;  %v42_v0 = vld [vmem:[#allocation2] sm:$0xff]  ;;  %vm46_vm0 = vcmask 261120   ;;  %v43_v2 = vld [vmem:[#allocation2 + $0x8] sm:$0xff]  ;;  %v209_v6 = vmov 32.0  }
   0xd   :  { %v44_v1 = vmul.f32 %v42_v0, %v42_v0  ;;  %v45_v4 = vmul.f32 %v43_v2, %v43_v2  ;;  %121 = vrcp.f32 %v209_v6  ;;  %v120_v27 = vld [vmem:[#allocation5] ss:$0 sm:$0xff]  ;;  %s210_s0 = smov [#allocation7]   ;;  %s100_s23 = sshll.u32 %s247_s2, 4  ;;  %s101_s23 = int_to_ptr.hbm [resolvable:$true] %s100_s23 }
   0xe   :  { %s98_s1 = sshll.u32 %s210_s0, 4  ;;  %s99_s1 = int_to_ptr.vmem [resolvable:$true] %s98_s1 }
   0xf   :  { %v47_v3 = vsel %vm46_vm0, %v44_v1, 0.0  ;;  %v50_v5 = vsel %vm46_vm0, %v45_v4, 0.0 }
  0x10   :  { %48 = vadd.xlane.f32.xlu0 %v47_v3 }
  0x13   :  { %v122_v7 = vpop.eup %121 }
  0x14   :  { %v54_v8 = vmul.f32 32.0, %v122_v7  ;;  %vm58_vm1 = vweird.f32 %v122_v7 }
  0x16   :  { %v55_v9 = vsub.f32 1.0, %v54_v8 }
  0x18   :  { %51 = vadd.xlane.f32.xlu0 %v50_v5  ;;  %v56_v10 = vmul.f32 %v122_v7, %v55_v9 }
  0x1a   :  { %v57_v11 = vadd.f32 %v122_v7, %v56_v10 }
  0x1c   :  { %v59_v12 = vsel %vm58_vm1, %v122_v7, %v57_v11 }
  0x83   :  { %v49_v13 = vpop.xlane.xlu0 %48 }
  0x84   :  { %v60_v14 = vmul.f32 %v59_v12, %v49_v13 }
  0x86   :  { %v62_v15 = vadd.f32 1e-05, %v60_v14 }
  0x88   :  { %123 = vrsqrt.f32 %v62_v15  ;;  %vm70_vm3 = vweird.f32 %v62_v15 }
  0x8b   :  { %v52_v16 = vpop.xlane.xlu0 %51 }
  0x8c   :  { %v61_v17 = vmul.f32 %v59_v12, %v52_v16 }
  0x8e   :  { %v124_v18 = vpop.eup %123  ;;  %v63_v19 = vadd.f32 1e-05, %v61_v17 }
  0x8f   :  { %v65_v20 = vmul.f32 %v124_v18, %v62_v15  ;;  %vm71_vm2 = vweird.f32 %v124_v18 }
  0x90   :  { %125 = vrsqrt.f32 %v63_v19  ;;  %vm72_vm4 = vmor %vm70_vm3, %vm71_vm2  ;;  %vm80_vm6 = vweird.f32 %v63_v19 }
  0x91   :  { %v66_v21 = vmul.f32 %v124_v18, %v65_v20 }
  0x93   :  { %v67_v22 = vmul.f32 0.5, %v66_v21 }
  0x95   :  { %v68_v23 = vsub.f32 1.5, %v67_v22 }
  0x96   :  { %v126_v24 = vpop.eup %125 }
  0x97   :  { %v69_v25 = vmul.f32 %v124_v18, %v68_v23  ;;  %v75_v26 = vmul.f32 %v126_v24, %v63_v19  ;;  %vm81_vm5 = vweird.f32 %v126_v24 }
  0x98   :  { %vm82_vm7 = vmor %vm80_vm6, %vm81_vm5 }
  0x99   :  { %v73_v28 = vsel %vm72_vm4, %v124_v18, %v69_v25  ;;  %v76_v29 = vmul.f32 %v126_v24, %v75_v26 }
  0x9a   :  { %v85_v30 = vmul.f32 %v73_v28, %v42_v0 }
  0x9b   :  { %v77_v31 = vmul.f32 0.5, %v76_v29 }
  0x9c   :  { %v90_v32 = vmul.f32 %v120_v27, %v85_v30 }
  0x9d   :  { %v78_v33 = vsub.f32 1.5, %v77_v31 }
  0x9e   :  { %92 = vst.msk [vmem:[#allocation7] sm:$0xff] %vm46_vm0, %v90_v32 }
  0x9f   :  { %v79_v34 = vmul.f32 %v126_v24, %v78_v33 }
  0xa1   :  { %v83_v35 = vsel %vm82_vm7, %v126_v24, %v79_v34 }
  0xa2   :  { %v86_v36 = vmul.f32 %v83_v35, %v43_v2 }
  0xa4   :  { %v91_v37 = vmul.f32 %v120_v27, %v86_v36 }
  0xa6   :  { %93 = vst.msk [vmem:[#allocation7 + $0x8] sm:$0xff] %vm46_vm0, %v91_v37 }
  0xa7   :  { %106 = dma.vmem_to_hbm [thread:$0]  %s99_s1, 256, %s101_s23, [#allocation4], %s206_s17, %s206_s17, %s207_s18  }
  0xa8   :  { %203 = dma.done.wait [#allocation4], 256  }
  0xa9   :  { %204 = vsyncadd [#allocation4], 4294967040 }
  0xaa   :  { %111 = vsyncpa [#allocation3], 1 }
  0xab   :  { %112 = vsyncpa [#allocation6], 1 }
  0xac   :  { %113 = vsyncpa [#allocation4], 1 }

</bundles_post_ra>
